<compile_context>
chip_gen: v7x
topology: tpu7x:2x2x1
jax: 0.10.0
libtpu: 0.0.40
codegen_flags: <defaults>
</compile_context>

<pallas_src>
import functools

import jax
import jax.numpy as jnp
from jax import lax
from jax.experimental import pallas as pl
from jax.experimental.pallas import tpu as pltpu

LN_EPS = 1e-5


def _round_up(v, m):
    return (v + m - 1) // m * m


def ffn_kernel(x_ref, w1_ref, w2_ref, gamma_ref, beta_ref, o_ref, acc_ref,
               *, e_real, eps):
    kf = pl.program_id(1)

    @pl.when(kf == 0)
    def _init():
        acc_ref[...] = jnp.zeros_like(acc_ref)

    # fc1 slab + SiLU + fc2 slab, accumulated in f32. Operands stay in their
    # native dtype so bf16 inputs hit the full-rate MXU path.
    x = x_ref[...]                                                     # [TM, Ep]
    h = jnp.dot(x, w1_ref[...], preferred_element_type=jnp.float32)   # [TM, TF]
    h = h * jax.nn.sigmoid(h)                                          # SiLU (EUP)
    acc_ref[...] += jnp.dot(h.astype(w2_ref.dtype), w2_ref[...],
                            preferred_element_type=jnp.float32)        # [TM, Ep]

    @pl.when(kf == pl.num_programs(1) - 1)
    def _finalize():
        # residual + LayerNorm epilogue in f32.
        z = acc_ref[...] + x_ref[...].astype(jnp.float32)              # [TM, Ep]
        e_pad = z.shape[-1]
        if e_real == e_pad:
            mean = jnp.mean(z, axis=-1, keepdims=True)
            d = z - mean
            var = jnp.mean(d * d, axis=-1, keepdims=True)
        else:
            # E was padded to a multiple of 128: masked statistics over the
            # real lanes only (padded lanes of z are exactly zero).
            lane = lax.broadcasted_iota(jnp.int32, z.shape, 1)
            mask = (lane < e_real).astype(jnp.float32)
            inv_n = 1.0 / float(e_real)
            mean = jnp.sum(z * mask, axis=-1, keepdims=True) * inv_n
            d = (z - mean) * mask
            var = jnp.sum(d * d, axis=-1, keepdims=True) * inv_n
        zn = (z - mean) * lax.rsqrt(var + eps)
        out = (zn * gamma_ref[...].astype(jnp.float32)
               + beta_ref[...].astype(jnp.float32))
        o_ref[...] = out.astype(o_ref.dtype)


def feed_forward(x, w1_t, w2_t, gamma, beta, *, tile_m=256, tile_f=512):
    """x: [seq, batch, E]; w1_t: [E, F]; w2_t: [F, E]; gamma, beta: [E]."""
    seq, batch, E = x.shape
    F = w1_t.shape[1]
    M = seq * batch
    dtype = x.dtype
    itemsize = jnp.dtype(dtype).itemsize

    # Sublane packing: 8 rows for 32-bit dtypes, 16 for bf16.
    row_mult = 16 if dtype == jnp.bfloat16 else 8
    tile_m = min(_round_up(tile_m, row_mult), _round_up(M, row_mult))
    Mp = _round_up(M, tile_m)

    Ep = _round_up(E, 128)
    tile_f = min(_round_up(tile_f, 128), _round_up(F, 128))
    Fp = _round_up(F, tile_f)

    # Zero-pad to lane/sublane-aligned shapes (padding is mathematically inert;
    # LayerNorm uses masked stats over the real E lanes inside the kernel).
    x2d = jnp.pad(x.reshape(M, E), ((0, Mp - M), (0, Ep - E)))
    w1p = jnp.pad(w1_t, ((0, Ep - E), (0, Fp - F)))
    w2p = jnp.pad(w2_t, ((0, Fp - F), (0, Ep - E)))
    gamma2d = jnp.pad(gamma, (0, Ep - E)).reshape(1, Ep)
    beta2d = jnp.pad(beta, (0, Ep - E)).reshape(1, Ep)

    grid = (Mp // tile_m, Fp // tile_f)

    # VMEM footprint of the chosen tiles (double-buffered pipeline blocks +
    # f32 accumulator), used to set an explicit scoped-VMEM limit. Capped at
    # 64 MiB so the same config stays within v7x's per-TC VMEM.
    vmem_needed = (
        2 * tile_m * Ep * itemsize        # x tile
        + 2 * Ep * tile_f * itemsize      # w1 slab
        + 2 * tile_f * Ep * itemsize      # w2 slab
        + 2 * tile_m * Ep * itemsize      # out tile
        + tile_m * Ep * 4                 # f32 accumulator
        + 4 * Ep * 4                      # gamma / beta
    )
    vmem_limit = int(min(max(int(vmem_needed * 1.5), 32 * 1024 * 1024),
                         64 * 1024 * 1024))

    cost = pl.CostEstimate(
        flops=4 * M * E * F,                                    # two matmuls
        transcendentals=M * F,                                  # sigmoid
        bytes_accessed=(2 * M * E + 2 * E * F + 2 * E) * itemsize,
    )

    kernel = functools.partial(ffn_kernel, e_real=E, eps=LN_EPS)

    out2d = pl.pallas_call(
        kernel,
        out_shape=jax.ShapeDtypeStruct((Mp, Ep), dtype),
        grid_spec=pltpu.PrefetchScalarGridSpec(
            num_scalar_prefetch=0,
            grid=grid,
            in_specs=[
                pl.BlockSpec((tile_m, Ep), lambda i, k: (i, 0)),   # x rows
                pl.BlockSpec((Ep, tile_f), lambda i, k: (0, k)),   # w1^T slab
                pl.BlockSpec((tile_f, Ep), lambda i, k: (k, 0)),   # w2^T slab
                pl.BlockSpec((1, Ep), lambda i, k: (0, 0)),        # gamma
                pl.BlockSpec((1, Ep), lambda i, k: (0, 0)),        # beta
            ],
            out_specs=pl.BlockSpec((tile_m, Ep), lambda i, k: (i, 0)),
            scratch_shapes=[pltpu.VMEM((tile_m, Ep), jnp.float32)],
        ),
        compiler_params=pltpu.CompilerParams(
            dimension_semantics=("parallel", "arbitrary"),
            vmem_limit_bytes=vmem_limit,
        ),
        cost_estimate=cost,
    )(x2d, w1p, w2p, gamma2d, beta2d)

    return out2d[:M, :E].reshape(seq, batch, E)


def reference(x, w1_t, w2_t, gamma, beta):
    h = x @ w1_t
    h = h * jax.nn.sigmoid(h)
    y = h @ w2_t
    z = y + x
    mean = jnp.mean(z, axis=-1, keepdims=True)
    var = jnp.mean((z - mean) ** 2, axis=-1, keepdims=True)
    zn = (z - mean) * lax.rsqrt(var + LN_EPS)
    return zn * gamma + beta


if __name__ == "__main__":
    seq_len, batch, embed, ffn = 8, 2, 32, 64

    key = jax.random.PRNGKey(0)
    kx, k1, k2 = jax.random.split(key, 3)

    x = jax.random.normal(kx, (seq_len, batch, embed), dtype=jnp.float32)

    # nn.Linear default init: U(-1/sqrt(fan_in), 1/sqrt(fan_in)); bias=False.
    b1 = 1.0 / (embed ** 0.5)
    b2 = 1.0 / (ffn ** 0.5)
    # PyTorch fc1.weight is [ffn, embed]; store transposed [embed, ffn].
    w1_t = jax.random.uniform(k1, (embed, ffn), minval=-b1, maxval=b1,
                              dtype=jnp.float32)
    # PyTorch fc2.weight is [embed, ffn]; store transposed [ffn, embed].
    w2_t = jax.random.uniform(k2, (ffn, embed), minval=-b2, maxval=b2,
                              dtype=jnp.float32)
    # nn.LayerNorm default init: weight=1, bias=0.
    gamma = jnp.ones((embed,), dtype=jnp.float32)
    beta = jnp.zeros((embed,), dtype=jnp.float32)

    out = feed_forward(x, w1_t, w2_t, gamma, beta)
    out = jax.block_until_ready(out)

    ref = reference(x, w1_t, w2_t, gamma, beta)
    assert out.shape == (seq_len, batch, embed)
    assert jnp.allclose(out, ref, atol=1e-5, rtol=1e-5), "mismatch vs reference"

    print("KERNEL_OK")
</pallas_src>

<mosaic_0001>
module attributes {stable_mosaic.version = 11 : i64} {
  func.func @ffn_kernel(%arg0: i32, %arg1: i32, %arg2: memref<16x128xf32, #tpu.memory_space<vmem>>, %arg3: memref<128x128xf32, #tpu.memory_space<vmem>>, %arg4: memref<128x128xf32, #tpu.memory_space<vmem>>, %arg5: memref<1x128xf32, #tpu.memory_space<vmem>>, %arg6: memref<1x128xf32, #tpu.memory_space<vmem>>, %arg7: memref<16x128xf32, #tpu.memory_space<vmem>>, %arg8: memref<16x128xf32, #tpu.memory_space<vmem>>) attributes {dimension_semantics = [#tpu.dimension_semantics<parallel>, #tpu.dimension_semantics<arbitrary>], iteration_bounds = array<i64: 1, 1>, scalar_prefetch = 0 : i64, scratch_operands = 1 : i64, tpu.core_type = #tpu.core_type<tc>, window_params = [{transform_indices = @transform_0, window_bounds = array<i64: 16, 128>}, {transform_indices = @transform_1, window_bounds = array<i64: 128, 128>}, {transform_indices = @transform_2, window_bounds = array<i64: 128, 128>}, {pipeline_mode = #tpu.pipeline_mode<synchronous>, transform_indices = @transform_3, window_bounds = array<i64: 1, 128>}, {pipeline_mode = #tpu.pipeline_mode<synchronous>, transform_indices = @transform_4, window_bounds = array<i64: 1, 128>}, {transform_indices = @transform_5, window_bounds = array<i64: 16, 128>}]} {
    %c0_i32 = arith.constant 0 : i32
    %0 = arith.cmpi eq, %arg1, %c0_i32 : i32
    %1 = arith.extui %0 : i1 to i32
    %c0_i32_0 = arith.constant 0 : i32
    %2 = arith.cmpi ne, %1, %c0_i32_0 : i32
    scf.if %2 {
      %cst_14 = arith.constant 0.000000e+00 : f32
      %20 = vector.broadcast %cst_14 : f32 to vector<16x128xf32>
      %c0_15 = arith.constant 0 : index
      %c0_16 = arith.constant 0 : index
      %21 = vector.load %arg8[%c0_15, %c0_16] : memref<16x128xf32, #tpu.memory_space<vmem>>, vector<16x128xf32>
      tpu.vector_store %arg8[%c0_15, %c0_16], %20 {strides = array<i32>} : memref<16x128xf32, #tpu.memory_space<vmem>>, vector<16x128xf32>,
    } else {
    }
    %c0 = arith.constant 0 : index
    %c0_1 = arith.constant 0 : index
    %3 = vector.load %arg2[%c0, %c0_1] : memref<16x128xf32, #tpu.memory_space<vmem>>, vector<16x128xf32>
    %c0_2 = arith.constant 0 : index
    %c0_3 = arith.constant 0 : index
    %4 = vector.load %arg3[%c0_2, %c0_3] : memref<128x128xf32, #tpu.memory_space<vmem>>, vector<128x128xf32>
    %cst = arith.constant dense<0.000000e+00> : vector<16x128xf32>
    %5 = tpu.matmul %3, %4, %cst {dimension_numbers = #tpu.dot_dimension_numbers<[1], [0], [0], [1], [0, 0, 1, 1], [], []>} : vector<16x128xf32>, vector<128x128xf32>, vector<16x128xf32> -> vector<16x128xf32>
    %6 = arith.negf %5 : vector<16x128xf32>
    %7 = math.exp %6 : vector<16x128xf32>
    %cst_4 = arith.constant 1.000000e+00 : f32
    %8 = vector.broadcast %cst_4 : f32 to vector<16x128xf32>
    %9 = arith.addf %8, %7 : vector<16x128xf32>
    %10 = arith.divf %8, %9 : vector<16x128xf32>
    %11 = arith.mulf %5, %10 : vector<16x128xf32>
    %c0_5 = arith.constant 0 : index
    %c0_6 = arith.constant 0 : index
    %12 = vector.load %arg8[%c0_5, %c0_6] : memref<16x128xf32, #tpu.memory_space<vmem>>, vector<16x128xf32>
    %c0_7 = arith.constant 0 : index
    %c0_8 = arith.constant 0 : index
    %13 = vector.load %arg4[%c0_7, %c0_8] : memref<128x128xf32, #tpu.memory_space<vmem>>, vector<128x128xf32>
    %cst_9 = arith.constant dense<0.000000e+00> : vector<16x128xf32>
    %14 = tpu.matmul %11, %13, %cst_9 {dimension_numbers = #tpu.dot_dimension_numbers<[1], [0], [0], [1], [0, 0, 1, 1], [], []>} : vector<16x128xf32>, vector<128x128xf32>, vector<16x128xf32> -> vector<16x128xf32>
    %15 = arith.addf %12, %14 : vector<16x128xf32>
    %c0_10 = arith.constant 0 : index
    %c0_11 = arith.constant 0 : index
    %16 = vector.load %arg8[%c0_10, %c0_11] : memref<16x128xf32, #tpu.memory_space<vmem>>, vector<16x128xf32>
    tpu.vector_store %arg8[%c0_10, %c0_11], %15 {strides = array<i32>} : memref<16x128xf32, #tpu.memory_space<vmem>>, vector<16x128xf32>,
    %c0_i32_12 = arith.constant 0 : i32
    %17 = arith.cmpi eq, %arg1, %c0_i32_12 : i32
    %18 = arith.extui %17 : i1 to i32
    %c0_i32_13 = arith.constant 0 : i32
    %19 = arith.cmpi ne, %18, %c0_i32_13 : i32
    scf.if %19 {
      %c0_14 = arith.constant 0 : index
      %c0_15 = arith.constant 0 : index
      %20 = vector.load %arg8[%c0_14, %c0_15] : memref<16x128xf32, #tpu.memory_space<vmem>>, vector<16x128xf32>
      %c0_16 = arith.constant 0 : index
      %c0_17 = arith.constant 0 : index
      %21 = vector.load %arg2[%c0_16, %c0_17] : memref<16x128xf32, #tpu.memory_space<vmem>>, vector<16x128xf32>
      %22 = arith.addf %20, %21 : vector<16x128xf32>
      %23 = tpu.iota {dimensions = array<i32: 1>} : vector<16x128xi32>
      %c32_i32 = arith.constant 32 : i32
      %24 = vector.broadcast %c32_i32 : i32 to vector<16x128xi32>
      %25 = arith.cmpi slt, %23, %24 : vector<16x128xi32>
      %26 = arith.extui %25 : vector<16x128xi1> to vector<16x128xi32>
      %27 = arith.sitofp %26 : vector<16x128xi32> to vector<16x128xf32>
      %28 = arith.mulf %22, %27 : vector<16x128xf32>
      %cst_18 = arith.constant dense<0.000000e+00> : vector<16xf32>
      %29 = vector.multi_reduction <add>, %28, %cst_18 [1] : vector<16x128xf32> to vector<16xf32>
      %30 = vector.shape_cast %29 : vector<16xf32> to vector<16x1xf32>
      %cst_19 = arith.constant 3.125000e-02 : f32
      %31 = vector.broadcast %cst_19 : f32 to vector<16x1xf32>
      %32 = arith.mulf %30, %31 : vector<16x1xf32>
      %33 = vector.broadcast %32 : vector<16x1xf32> to vector<16x128xf32>
      %34 = arith.subf %22, %33 : vector<16x128xf32>
      %35 = arith.mulf %34, %27 : vector<16x128xf32>
      %36 = arith.mulf %35, %35 : vector<16x128xf32>
      %cst_20 = arith.constant dense<0.000000e+00> : vector<16xf32>
      %37 = vector.multi_reduction <add>, %36, %cst_20 [1] : vector<16x128xf32> to vector<16xf32>
      %38 = vector.shape_cast %37 : vector<16xf32> to vector<16x1xf32>
      %cst_21 = arith.constant 3.125000e-02 : f32
      %39 = vector.broadcast %cst_21 : f32 to vector<16x1xf32>
      %40 = arith.mulf %38, %39 : vector<16x1xf32>
      %41 = vector.broadcast %32 : vector<16x1xf32> to vector<16x128xf32>
      %42 = arith.subf %22, %41 : vector<16x128xf32>
      %cst_22 = arith.constant 9.99999974E-6 : f32
      %43 = vector.broadcast %cst_22 : f32 to vector<16x1xf32>
      %44 = arith.addf %40, %43 : vector<16x1xf32>
      %45 = math.rsqrt %44 : vector<16x1xf32>
      %46 = vector.broadcast %45 : vector<16x1xf32> to vector<16x128xf32>
      %47 = arith.mulf %42, %46 : vector<16x128xf32>
      %c0_23 = arith.constant 0 : index
      %c0_24 = arith.constant 0 : index
      %48 = vector.load %arg5[%c0_23, %c0_24] : memref<1x128xf32, #tpu.memory_space<vmem>>, vector<1x128xf32>
      %49 = vector.broadcast %48 : vector<1x128xf32> to vector<16x128xf32>
      %50 = arith.mulf %47, %49 : vector<16x128xf32>
      %c0_25 = arith.constant 0 : index
      %c0_26 = arith.constant 0 : index
      %51 = vector.load %arg6[%c0_25, %c0_26] : memref<1x128xf32, #tpu.memory_space<vmem>>, vector<1x128xf32>
      %52 = vector.broadcast %51 : vector<1x128xf32> to vector<16x128xf32>
      %53 = arith.addf %50, %52 : vector<16x128xf32>
      %c0_27 = arith.constant 0 : index
      %c0_28 = arith.constant 0 : index
      %54 = vector.load %arg7[%c0_27, %c0_28] : memref<16x128xf32, #tpu.memory_space<vmem>>, vector<16x128xf32>
      tpu.vector_store %arg7[%c0_27, %c0_28], %53 {strides = array<i32>} : memref<16x128xf32, #tpu.memory_space<vmem>>, vector<16x128xf32>,
    } else {
    }
    return
  }
  func.func @transform_0(%arg0: i32, %arg1: i32) -> (i32, i32) {
    %c0_i32 = arith.constant 0 : i32
    %c0_i32_0 = arith.constant 0 : i32
    return %arg0, %c0_i32 : i32, i32
  }
  func.func @transform_1(%arg0: i32, %arg1: i32) -> (i32, i32) {
    %c0_i32 = arith.constant 0 : i32
    %c0_i32_0 = arith.constant 0 : i32
    return %c0_i32, %arg1 : i32, i32
  }
  func.func @transform_2(%arg0: i32, %arg1: i32) -> (i32, i32) {
    %c0_i32 = arith.constant 0 : i32
    %c0_i32_0 = arith.constant 0 : i32
    return %arg1, %c0_i32 : i32, i32
  }
  func.func @transform_3(%arg0: i32, %arg1: i32) -> (i32, i32) {
    %c0_i32 = arith.constant 0 : i32
    %c0_i32_0 = arith.constant 0 : i32
    %c0_i32_1 = arith.constant 0 : i32
    return %c0_i32, %c0_i32_0 : i32, i32
  }
  func.func @transform_4(%arg0: i32, %arg1: i32) -> (i32, i32) {
    %c0_i32 = arith.constant 0 : i32
    %c0_i32_0 = arith.constant 0 : i32
    %c0_i32_1 = arith.constant 0 : i32
    return %c0_i32, %c0_i32_0 : i32, i32
  }
  func.func @transform_5(%arg0: i32, %arg1: i32) -> (i32, i32) {
    %c0_i32 = arith.constant 0 : i32
    %c0_i32_0 = arith.constant 0 : i32
    return %arg0, %c0_i32 : i32, i32
  }
}

</mosaic_0001>

<bundles_post_ra>
// kernel: tpu_custom_call.1
= control target key start
LH: loop header
LB: loop body
LE: loop exit
PB: predicated region body
PF: predicated region fallthrough
CT: control target
= control target key end

     0   :  { %10 = vsyncpa [#allocation4], 0  ;;  %s756_s0 = inlined_call_operand.hbm [shape: f32[16,128], index: 0, kind: input, shape index: {}]   ;;  %s757_s1 = inlined_call_operand.hbm [shape: f32[128,128], index: 1, kind: input, shape index: {}]   ;;  %s758_s2 = inlined_call_operand.hbm [shape: f32[128,128], index: 2, kind: input, shape index: {}]   ;;  %s759_s3 = inlined_call_operand.vmem [shape: f32[1,128], index: 3, kind: input, shape index: {}]   ;;  %s760_s4 = inlined_call_operand.vmem [shape: f32[1,128], index: 4, kind: input, shape index: {}]   ;;  %s761_s5 = inlined_call_operand.hbm [shape: f32[16,128], index: 5, kind: output, shape index: {}]  }
   0x1   :  { %11 = vsyncpa [#allocation7], 0 }
   0x2   :  { %12 = vsyncpa [#allocation5], 0  ;;  %s638_s18 = smov [#allocation6]   ;;  %s639_s20 = smov [#allocation3]  }
   0x3   :  { %s30_s19 = sshll.u32 %s638_s18, 4  ;;  %s18_s21 = sshll.u32 %s639_s20, 4  ;;  %s31_s19 = int_to_ptr.vmem [resolvable:$true] %s30_s19  ;;  %s675_s21 = int_to_ptr.vmem [resolvable:$true] %s18_s21 }
   0x4   :  { %s544_s24 = scalar_lea.hbm %s757_s1, 2048 }
   0x5   :  { %p545_p0 = scmp.ne.s32.totalorder %s757_s1, %s544_s24  ;;  %p548_p1 = scmp.lt.u32.totalorder %s544_s24, %s757_s1 }
   0x7   :  { %p550_p2 = pnand %p548_p1, %p545_p0 }
   0x9   :  { %553 = shalt.err (!%p550_p2)
}
   0xa   :  { %s554_s29 = scalar_lea.vmem %s31_s19, 2048  ;;  %p559_p4 = scmp.lt.s32.totalorder %s31_s19, %s31_s19 }
   0xb   :  { %p555_p3 = scmp.ne.s32.totalorder %s31_s19, %s554_s29  ;;  %p560_p5 = scmp.lt.s32.totalorder %s554_s29, %s554_s29 }
   0xd   :  { %p561_p6 = por %p560_p5, %p559_p4 }
   0xf   :  { %p562_p7 = pnand %p561_p6, %p555_p3 }
  0x11   :  { %565 = shalt.err (!%p562_p7)
}
  0x12   :  { %s640_s30 = smov 128   ;;  %s641_s6 = smov 8  }
  0x13   :  { %36 = dma.hbm_to_vmem [thread:$0]  %s757_s1, 2048, %s31_s19, [#allocation7], %s640_s30, %s640_s30, %s641_s6  }
  0x14   :  { %s566_s11 = scalar_lea.hbm %s756_s0, 256 }
  0x15   :  { %p567_p8 = scmp.ne.s32.totalorder %s756_s0, %s566_s11  ;;  %p570_p9 = scmp.lt.u32.totalorder %s566_s11, %s756_s0 }
  0x17   :  { %p572_p10 = pnand %p570_p9, %p567_p8 }
  0x19   :  { %575 = shalt.err (!%p572_p10)
}
  0x1a   :  { %s576_s16 = scalar_lea.vmem %s675_s21, 256  ;;  %p581_p12 = scmp.lt.s32.totalorder %s675_s21, %s675_s21 }
  0x1b   :  { %p577_p11 = scmp.ne.s32.totalorder %s675_s21, %s576_s16  ;;  %p582_p13 = scmp.lt.s32.totalorder %s576_s16, %s576_s16 }
  0x1d   :  { %p583_p0 = por %p582_p13, %p581_p12 }
  0x1f   :  { %p584_p1 = pnand %p583_p0, %p577_p11 }
  0x21   :  { %587 = shalt.err (!%p584_p1)
}
  0x22   :  { %24 = dma.hbm_to_vmem [thread:$0]  %s756_s0, 256, %s675_s21, [#allocation4], %s640_s30, %s640_s30, %s641_s6  }
  0x23   :  { %s642_s18 = smov [#allocation8]   ;;  %s588_s23 = scalar_lea.hbm %s758_s2, 2048 }
  0x24   :  { %s42_s19 = sshll.u32 %s642_s18, 4  ;;  %p589_p2 = scmp.ne.s32.totalorder %s758_s2, %s588_s23  ;;  %s43_s19 = int_to_ptr.vmem [resolvable:$true] %s42_s19 }
  0x25   :  { %p592_p3 = scmp.lt.u32.totalorder %s588_s23, %s758_s2 }
  0x27   :  { %p594_p4 = pnand %p592_p3, %p589_p2 }
  0x29   :  { %597 = shalt.err (!%p594_p4)
}
  0x2a   :  { %s598_s28 = scalar_lea.vmem %s43_s19, 2048  ;;  %p603_p6 = scmp.lt.s32.totalorder %s43_s19, %s43_s19 }
  0x2b   :  { %p599_p5 = scmp.ne.s32.totalorder %s43_s19, %s598_s28  ;;  %p604_p7 = scmp.lt.s32.totalorder %s598_s28, %s598_s28 }
  0x2d   :  { %p605_p8 = por %p604_p7, %p603_p6 }
  0x2f   :  { %p606_p9 = pnand %p605_p8, %p599_p5 }
  0x31   :  { %609 = shalt.err (!%p606_p9)
}
  0x32   :  { %48 = dma.hbm_to_vmem [thread:$0]  %s758_s2, 2048, %s43_s19, [#allocation7], %s640_s30, %s640_s30, %s641_s6  }
  0x33   :  { %632 = dma.done.wait [#allocation4], 256  }
  0x34   :  { %633 = vsyncadd [#allocation4], 4294967040 }
  0x35   :  { %634 = dma.done.wait [#allocation7], 4096  }
  0x36   :  { %635 = vsyncadd [#allocation7], 4294963200  ;;  %v70_v0 = vld [vmem:[#allocation6] sm:$0xff]  ;;  %v71_v1 = vld [vmem:[#allocation6 + $0x8] sm:$0xff]  ;;  %v281_v62 = vlaneseq  ;;  %s644_s9 = smov [#allocation9]  }
  0x37   :  { %v72_v2 = vld [vmem:[#allocation6 + $0x10] sm:$0xff]  ;;  %v461_v3 = vpack.c.bf16 %v71_v1, %v70_v0  ;;  %v73_v4 = vld [vmem:[#allocation6 + $0x18] sm:$0xff]  ;;  %v74_v6 = vld [vmem:[#allocation6 + $0x20] sm:$0xff]  ;;  %s337_s10 = sshll.u32 %s644_s9, 4  ;;  %s338_s10 = int_to_ptr.vmem [resolvable:$true] %s337_s10 }
  0x38   :  { %v465_v5 = vpack.c.bf16 %v73_v4, %v72_v2  ;;  %v75_v7 = vld [vmem:[#allocation6 + $0x28] sm:$0xff]  ;;  %v76_v9 = vld [vmem:[#allocation6 + $0x30] sm:$0xff]  ;;  %v77_v11 = vld [vmem:[#allocation6 + $0x38] sm:$0xff]  ;;  %v282_v63 = vand.u32 127, %v281_v62  ;;  %v643_v2 = vmov 0.0   ;;  %s610_s11 = scalar_lea.vmem %s338_s10, 256  ;;  %p615_p11 = scmp.lt.s32.totalorder %s338_s10, %s338_s10 }
  0x39   :  { %462 = vmatprep.subr.bf16.mxu0 %v461_v3  ;;  %v469_v8 = vpack.c.bf16 %v75_v7, %v74_v6  ;;  %v727_v10 = vld [vmem:[#allocation3] sm:$0xff]  ;;  %v177_v12 = vld [vmem:[#allocation8] sm:$0xff]  ;;  %v178_v13 = vld [vmem:[#allocation8 + $0x8] sm:$0xff]  ;;  %v473_v15 = vpack.c.bf16 %v77_v11, %v76_v9  ;;  %p611_p10 = scmp.ne.s32.totalorder %s338_s10, %s610_s11  ;;  %p616_p12 = scmp.lt.s32.totalorder %s610_s11, %s610_s11 }
  0x3a   :  { %464 = vmatpush3.bf16.msra.mxu0 %v461_v3  ;;  %423 = vmatprep.mubr.f32.mxu0 %v727_v10  ;;  %v493_v14 = vpack.c.bf16 %v178_v13, %v177_v12  ;;  %v78_v16 = vld [vmem:[#allocation6 + $0x40] sm:$0xff]  ;;  %v79_v17 = vld [vmem:[#allocation6 + $0x48] sm:$0xff]  ;;  %v80_v19 = vld [vmem:[#allocation6 + $0x50] sm:$0xff]  ;;  %vm283_vm0 = vcmp.lt.s32.totalorder %v282_v63, 32 }
  0x3b   :  { %466 = vmatprep.subr.bf16.mxu0 %v465_v5  ;;  %v477_v18 = vpack.c.bf16 %v79_v17, %v78_v16  ;;  %v81_v20 = vld [vmem:[#allocation6 + $0x58] sm:$0xff]  ;;  %v82_v22 = vld [vmem:[#allocation6 + $0x60] sm:$0xff]  ;;  %v83_v23 = vld [vmem:[#allocation6 + $0x68] sm:$0xff]  ;;  %v352_v3 = vsel %vm283_vm0, 1.0, %v643_v2  ;;  %p617_p13 = por %p616_p12, %p615_p11 }
  0x3c   :  { %494 = vmatprep.subr.bf16.mxu1 %v493_v14  ;;  %v481_v21 = vpack.c.bf16 %v81_v20, %v80_v19  ;;  %v485_v24 = vpack.c.bf16 %v83_v23, %v82_v22  ;;  %v84_v25 = vld [vmem:[#allocation6 + $0x70] sm:$0xff]  ;;  %v85_v26 = vld [vmem:[#allocation6 + $0x78] sm:$0xff]  ;;  %v181_v32 = vld [vmem:[#allocation8 + $0x20] sm:$0xff] }
  0x3d   :  { %496 = vmatpush3.bf16.msra.mxu1 %v493_v14  ;;  %v489_v27 = vpack.c.bf16 %v85_v26, %v84_v25  ;;  %v730_v28 = vld [vmem:[#allocation3 + $0x8] sm:$0xff]  ;;  %v179_v29 = vld [vmem:[#allocation8 + $0x10] sm:$0xff]  ;;  %v182_v33 = vld [vmem:[#allocation8 + $0x28] sm:$0xff]  ;;  %p618_p0 = pnand %p617_p13, %p611_p10 }
  0x3e   :  { %468 = vmatpush3.bf16.msra.mxu0 %v465_v5  ;;  %v180_v30 = vld [vmem:[#allocation8 + $0x18] sm:$0xff]  ;;  %v501_v34 = vpack.c.bf16 %v182_v33, %v181_v32  ;;  %v183_v35 = vld [vmem:[#allocation8 + $0x30] sm:$0xff]  ;;  %v185_v38 = vld [vmem:[#allocation8 + $0x40] sm:$0xff] }
  0x3f   :  { %470 = vmatprep.subr.bf16.mxu0 %v469_v8  ;;  %v497_v31 = vpack.c.bf16 %v180_v30, %v179_v29  ;;  %v184_v36 = vld [vmem:[#allocation8 + $0x38] sm:$0xff]  ;;  %v186_v39 = vld [vmem:[#allocation8 + $0x48] sm:$0xff]  ;;  %v187_v41 = vld [vmem:[#allocation8 + $0x50] sm:$0xff] }
  0x40   :  { %v505_v37 = vpack.c.bf16 %v184_v36, %v183_v35  ;;  %v509_v40 = vpack.c.bf16 %v186_v39, %v185_v38  ;;  %v188_v42 = vld [vmem:[#allocation8 + $0x58] sm:$0xff]  ;;  %v189_v44 = vld [vmem:[#allocation8 + $0x60] sm:$0xff]  ;;  %v190_v45 = vld [vmem:[#allocation8 + $0x68] sm:$0xff] }
  0x41   :  { %498 = vmatprep.subr.bf16.mxu1 %v497_v31  ;;  %v513_v43 = vpack.c.bf16 %v188_v42, %v187_v41  ;;  %v517_v46 = vpack.c.bf16 %v190_v45, %v189_v44  ;;  %v191_v47 = vld [vmem:[#allocation8 + $0x70] sm:$0xff]  ;;  %v192_v48 = vld [vmem:[#allocation8 + $0x78] sm:$0xff] }
  0x42   :  { %472 = vmatpush3.bf16.msra.mxu0 %v469_v8  ;;  %500 = vmatpush3.bf16.msra.mxu1 %v497_v31  ;;  %v521_v49 = vpack.c.bf16 %v192_v48, %v191_v47  ;;  %v353_v25 = vld [vmem:[%s759_s3] ss:$0 sm:$0xff] }
  0x43   :  { %474 = vmatprep.subr.bf16.mxu0 %v473_v15  ;;  %502 = vmatprep.subr.bf16.mxu1 %v501_v34 }
  0x46   :  { %476 = vmatpush3.bf16.msra.mxu0 %v473_v15  ;;  %504 = vmatpush3.bf16.msra.mxu1 %v501_v34 }
  0x47   :  { %478 = vmatprep.subr.bf16.mxu0 %v477_v18  ;;  %506 = vmatprep.subr.bf16.mxu1 %v505_v37 }
  0x4a   :  { %480 = vmatpush3.bf16.msra.mxu0 %v477_v18  ;;  %508 = vmatpush3.bf16.msra.mxu1 %v505_v37 }
  0x4b   :  { %482 = vmatprep.subr.bf16.mxu0 %v481_v21  ;;  %510 = vmatprep.subr.bf16.mxu1 %v509_v40 }
  0x4e   :  { %484 = vmatpush3.bf16.msra.mxu0 %v481_v21  ;;  %512 = vmatpush3.bf16.msra.mxu1 %v509_v40 }
  0x4f   :  { %486 = vmatprep.subr.bf16.mxu0 %v485_v24  ;;  %514 = vmatprep.subr.bf16.mxu1 %v513_v43 }
  0x52   :  { %488 = vmatpush3.bf16.msra.mxu0 %v485_v24  ;;  %516 = vmatpush3.bf16.msra.mxu1 %v513_v43 }
  0x53   :  { %490 = vmatprep.subr.bf16.mxu0 %v489_v27  ;;  %518 = vmatprep.subr.bf16.mxu1 %v517_v46 }
  0x56   :  { %492 = vmatpush3.bf16.msra.mxu0 %v489_v27  ;;  %520 = vmatpush3.bf16.msra.mxu1 %v517_v46  ;;  %v354_v27 = vld [vmem:[%s760_s4] ss:$0 sm:$0xff] }
  0x57   :  { %522 = vmatprep.subr.bf16.mxu1 %v521_v49 }
  0x59   :  { %424 = vmatmul.mubr.f32.vlgmr.msra.gmra.mrb[0].mxu0 %v730_v28 }
  0x5a   :  { %524 = vmatpush3.bf16.msra.mxu1 %v521_v49 }
 0x12c   :  { %v425_v50 = vpop.f32.mrb[0].mxu0 }
 0x12d   :  { %v351_v51 = vmul.f32 -1.442695, %v425_v50  ;;  %v152_v52 = vpop.f32.mrb[1].mxu0 }
 0x12e   :  { %v350_v53 = vmul.f32 -1.442695, %v152_v52 }
 0x12f   :  { %532 = vpow2.f32 %v351_v51 }
 0x130   :  { %534 = vpow2.f32 %v350_v53 }
 0x139   :  { %v533_v54 = vpop.eup %532 }
 0x13a   :  { %v535_v55 = vpop.eup %534  ;;  %v168_v56 = vadd.f32 1.0, %v533_v54 }
 0x13b   :  { %v167_v57 = vadd.f32 1.0, %v535_v55 }
 0x13c   :  { %536 = vrcp.f32 %v168_v56 }
 0x13d   :  { %538 = vrcp.f32 %v167_v57 }
 0x146   :  { %v537_v58 = vpop.eup %536 }
 0x147   :  { %v539_v59 = vpop.eup %538  ;;  %v174_v61 = vmul.f32 %v537_v58, %v425_v50 }
 0x148   :  { %v173_v60 = vmul.f32 %v539_v59, %v152_v52 }
 0x14a   :  { %458 = vmatprep.mubr.f32.mxu1 %v173_v60 }
 0x14b   :  { %459 = vmatmul.mubr.f32.vlgmr.msra.gmra.mrb[0].mxu1 %v174_v61 }
 0x21e   :  { %v460_v0 = vpop.f32.mrb[0].mxu1 }
 0x21f   :  { %v259_v1 = vpop.f32.mrb[1].mxu1  ;;  %v280_v5 = vadd.f32 %v460_v0, %v730_v28 }
 0x220   :  { %v279_v4 = vadd.f32 %v259_v1, %v727_v10 }
 0x221   :  { %v287_v7 = vmul.f32 %v352_v3, %v280_v5 }
 0x222   :  { %v286_v6 = vmul.f32 %v352_v3, %v279_v4 }
 0x224   :  { %288 = vadd.xlane.f32.xlu0 %v286_v6 }
 0x228   :  { %290 = vadd.xlane.f32.xlu0 %v287_v7 }
 0x2b1   :  { %v289_v8 = vpop.xlane.xlu0 %288 }
 0x2b2   :  { %v292_v9 = vmul.f32 0.03125, %v289_v8 }
 0x2b4   :  { %v294_v11 = vsub.f32 %v279_v4, %v292_v9 }
 0x2b5   :  { %v291_v12 = vpop.xlane.xlu0 %290 }
 0x2b6   :  { %v293_v13 = vmul.f32 0.03125, %v291_v12  ;;  %v296_v14 = vmul.f32 %v352_v3, %v294_v11 }
 0x2b8   :  { %v295_v15 = vsub.f32 %v280_v5, %v293_v13  ;;  %v298_v16 = vmul.f32 %v296_v14, %v296_v14 }
 0x2ba   :  { %300 = vadd.xlane.f32.xlu1 %v298_v16  ;;  %v297_v17 = vmul.f32 %v352_v3, %v295_v15 }
 0x2bc   :  { %v299_v18 = vmul.f32 %v297_v17, %v297_v17 }
 0x2be   :  { %302 = vadd.xlane.f32.xlu1 %v299_v18 }
 0x347   :  { %v301_v19 = vpop.xlane.xlu1 %300 }
 0x348   :  { %v304_v10 = vmul.f32 0.03125, %v301_v19 }
 0x34a   :  { %v306_v20 = vadd.f32 1e-05, %v304_v10 }
 0x34b   :  { %v303_v21 = vpop.xlane.xlu1 %302 }
 0x34c   :  { %540 = vrsqrt.f32 %v306_v20  ;;  %v305_v22 = vmul.f32 0.03125, %v303_v21 }
 0x34e   :  { %v307_v23 = vadd.f32 1e-05, %v305_v22 }
 0x350   :  { %542 = vrsqrt.f32 %v307_v23 }
 0x356   :  { %v541_v24 = vpop.eup %540 }
 0x357   :  { %v310_v26 = vmul.f32 %v541_v24, %v294_v11 }
 0x359   :  { %v319_v28 = vmul.f32 %v353_v25, %v310_v26 }
 0x35a   :  { %v543_v29 = vpop.eup %542 }
 0x35b   :  { %v311_v30 = vmul.f32 %v543_v29, %v295_v15  ;;  %v328_v31 = vadd.f32 %v354_v27, %v319_v28 }
 0x35d   :  { %v320_v32 = vmul.f32 %v353_v25, %v311_v30  ;;  %330 = vst [vmem:[#allocation9] sm:$0xff] %v328_v31 }
 0x35f   :  { %v329_v33 = vadd.f32 %v354_v27, %v320_v32 }
 0x361   :  { %331 = vst [vmem:[#allocation9 + $0x8] sm:$0xff] %v329_v33 }
 0x362   :  { %621 = shalt.err (!%p618_p0)
}
 0x363   :  { %s622_s12 = scalar_lea.hbm %s761_s5, 256 }
 0x364   :  { %p623_p1 = scmp.ne.s32.totalorder %s761_s5, %s622_s12  ;;  %p626_p2 = scmp.lt.u32.totalorder %s622_s12, %s761_s5 }
 0x366   :  { %p628_p3 = pnand %p626_p2, %p623_p1 }
 0x368   :  { %631 = shalt.err (!%p628_p3)
}
 0x369   :  { %343 = dma.vmem_to_hbm [thread:$0]  %s338_s10, 256, %s761_s5, [#allocation5], %s640_s30, %s640_s30, %s641_s6  }
 0x36a   :  { %636 = dma.done.wait [#allocation5], 256  }
 0x36b   :  { %637 = vsyncadd [#allocation5], 4294967040 }
 0x36c   :  { %347 = vsyncpa [#allocation4], 1 }
 0x36d   :  { %348 = vsyncpa [#allocation7], 1 }
 0x36e   :  { %349 = vsyncpa [#allocation5], 1 }

</bundles_post_ra>
